<compile_context>
chip_gen: v7x
topology: tpu7x:2x2x1
jax: 0.10.0
libtpu: 0.0.40
codegen_flags: <defaults>
</compile_context>

<pallas_src>
import jax
import jax.numpy as jnp
from jax.experimental import pallas as pl
from jax.experimental.pallas import tpu as pltpu

# Model hyper-parameters (from the PyTorch script).
HIDDEN_SIZE = 2
INPUT_SIZE = 4
NUM_CLASSES = 50
NUM_LAYERS = 1          # single layer -> dropout=0.2 has no effect in forward
FC1_SIZE = 128


def _lstm_mlp_kernel(x_ref, wih_ref, whh_ref, b_ref,
                     w1_ref, b1_ref, w2_ref, b2_ref, out_ref):
    """Whole forward pass in one kernel invocation (shapes are tiny).

    Packed-weight layout (gate order i, f, o, g along lanes):
      x_ref   : (T, B, D)
      wih_ref : (D, 4H)    whh_ref : (H, 4H)    b_ref : (1, 4H)  (= b_ih + b_hh)
      w1_ref  : (H, F1)    b1_ref  : (1, F1)
      w2_ref  : (F1, C)    b2_ref  : (1, C)
    """
    T, B, D = x_ref.shape
    H = whh_ref.shape[0]

    # ---- 1. Hoisted input projection: ONE dot + ONE bias add for all steps.
    x_flat = x_ref[...].reshape(T * B, D)
    xg = jnp.dot(x_flat, wih_ref[...], preferred_element_type=jnp.float32)
    xg = (xg + b_ref[...]).reshape(T, B, 4 * H)

    # Load small weight tiles once (values, not refs) so the unrolled loop
    # only issues cheap vector slices/broadcasts.
    whh = whh_ref[...]          # (H, 4H)
    w1 = w1_ref[...]            # (H, F1)

    h = jnp.zeros((B, H), jnp.float32)
    c = jnp.zeros((B, H), jnp.float32)

    # ---- 2. Fully unrolled recurrence; h-recurrence as VPU broadcast-FMAs.
    for t in range(T):
        pre = xg[t]                                   # (B, 4H) precomputed
        for j in range(H):                            # K=2 contraction on VPU
            pre = pre + h[:, j:j + 1] * whh[j:j + 1, :]
        s = jax.nn.sigmoid(pre[:, :3 * H])            # i, f, o (contiguous)
        g = jnp.tanh(pre[:, 3 * H:])                  # g
        i_g = s[:, :H]
        f_g = s[:, H:2 * H]
        o_g = s[:, 2 * H:3 * H]
        c = f_g * c + i_g * g
        h = o_g * jnp.tanh(c)

    # ---- 3. MLP head: ReLU -> fc_1 (K=2 via VPU FMA) -> ReLU -> fc_2 (MXU).
    hn = jnp.maximum(h, 0.0)
    z1 = b1_ref[...]                                  # (1, F1) broadcasts to (B, F1)
    for j in range(H):
        z1 = z1 + hn[:, j:j + 1] * w1[j:j + 1, :]
    z1 = jnp.maximum(z1, 0.0)
    z2 = jnp.dot(z1, w2_ref[...], preferred_element_type=jnp.float32) + b2_ref[...]
    out_ref[...] = z2.astype(out_ref.dtype)


def lstm_forward(x, params):
    """x: (B, T, INPUT_SIZE) float32 -> (B, NUM_CLASSES) float32."""
    B, T, D = x.shape
    assert D == INPUT_SIZE
    x_tm = jnp.transpose(x, (1, 0, 2))  # time-major (T, B, D)

    wih, whh, b, w1, b1, w2, b2 = params
    vmem = pl.BlockSpec(memory_space=pltpu.MemorySpace.VMEM)

    return pl.pallas_call(
        _lstm_mlp_kernel,
        out_shape=jax.ShapeDtypeStruct((B, NUM_CLASSES), jnp.float32),
        in_specs=[vmem] * 8,
        out_specs=vmem,
    )(x_tm, wih, whh, b, w1, b1, w2, b2)


def init_params(key):
    """Deterministic init mirroring PyTorch default shapes / uniform ranges.

    Weights are stored lane-packed for the kernel:
      W_ih -> (D, 4H), W_hh -> (H, 4H), bias -> (1, 4H), gate order (i, f, o, g)
      (sigmoid gates contiguous first, tanh gate last).
    """
    H, D, C, F1 = HIDDEN_SIZE, INPUT_SIZE, NUM_CLASSES, FC1_SIZE
    ks = jax.random.split(key, 8)

    k_lstm = 1.0 / jnp.sqrt(H)
    # PyTorch stores W_ih: (4H, D), W_hh: (4H, H) with gate order (i, f, g, o).
    w_ih = jax.random.uniform(ks[0], (4, H, D), jnp.float32, -k_lstm, k_lstm)
    w_hh = jax.random.uniform(ks[1], (4, H, H), jnp.float32, -k_lstm, k_lstm)
    b_ih = jax.random.uniform(ks[2], (4, H), jnp.float32, -k_lstm, k_lstm)
    b_hh = jax.random.uniform(ks[3], (4, H), jnp.float32, -k_lstm, k_lstm)

    order = (0, 1, 3, 2)  # repack (i, f, g, o) -> (i, f, o, g)
    wih_p = jnp.concatenate([w_ih[k].T for k in order], axis=1)        # (D, 4H)
    whh_p = jnp.concatenate([w_hh[k].T for k in order], axis=1)        # (H, 4H)
    b_p = jnp.concatenate([b_ih[k] + b_hh[k] for k in order]).reshape(1, 4 * H)

    k1 = 1.0 / jnp.sqrt(H)
    w1 = jax.random.uniform(ks[4], (H, F1), jnp.float32, -k1, k1)      # fc_1.weight.T
    b1 = jax.random.uniform(ks[5], (1, F1), jnp.float32, -k1, k1)
    k2 = 1.0 / jnp.sqrt(F1)
    w2 = jax.random.uniform(ks[6], (F1, C), jnp.float32, -k2, k2)      # fc_2.weight.T
    b2 = jax.random.uniform(ks[7], (1, C), jnp.float32, -k2, k2)

    return (wih_p, whh_p, b_p, w1, b1, w2, b2)


def lstm_forward_ref(x, params):
    """Pure-JAX reference (same packed-weight layout) for correctness checking."""
    wih, whh, b, w1, b1, w2, b2 = params
    B, T, _ = x.shape
    H = whh.shape[0]
    h = jnp.zeros((B, H), jnp.float32)
    c = jnp.zeros((B, H), jnp.float32)
    for t in range(T):
        pre = x[:, t, :] @ wih + h @ whh + b          # (B, 4H), order (i,f,o,g)
        i = jax.nn.sigmoid(pre[:, :H])
        f = jax.nn.sigmoid(pre[:, H:2 * H])
        o = jax.nn.sigmoid(pre[:, 2 * H:3 * H])
        g = jnp.tanh(pre[:, 3 * H:])
        c = f * c + i * g
        h = o * jnp.tanh(c)
    hn = jnp.maximum(h, 0.0)
    z1 = jnp.maximum(hn @ w1 + b1, 0.0)
    return z1 @ w2 + b2


if __name__ == "__main__":
    key = jax.random.PRNGKey(0)
    k_x, k_p = jax.random.split(key)

    B, T = 2, 8
    x = jax.random.normal(k_x, (B, T, INPUT_SIZE), jnp.float32)
    params = init_params(k_p)

    out = lstm_forward(x, params)
    out = jax.block_until_ready(out)

    ref = lstm_forward_ref(x, params)
    assert out.shape == (B, NUM_CLASSES)
    assert jnp.allclose(out, ref, atol=1e-5, rtol=1e-5)

    print("KERNEL_OK")
</pallas_src>

<mosaic_0001>
module attributes {stable_mosaic.version = 11 : i64} {
  func.func @_lstm_mlp_kernel(%arg0: memref<8x2x4xf32, #tpu.memory_space<vmem>>, %arg1: memref<4x8xf32, #tpu.memory_space<vmem>>, %arg2: memref<2x8xf32, #tpu.memory_space<vmem>>, %arg3: memref<1x8xf32, #tpu.memory_space<vmem>>, %arg4: memref<2x128xf32, #tpu.memory_space<vmem>>, %arg5: memref<1x128xf32, #tpu.memory_space<vmem>>, %arg6: memref<128x50xf32, #tpu.memory_space<vmem>>, %arg7: memref<1x50xf32, #tpu.memory_space<vmem>>, %arg8: memref<2x50xf32, #tpu.memory_space<vmem>>) attributes {dimension_semantics = [], scalar_prefetch = 0 : i64, scratch_operands = 0 : i64, tpu.core_type = #tpu.core_type<tc>} {
    %c0 = arith.constant 0 : index
    %c0_0 = arith.constant 0 : index
    %c0_1 = arith.constant 0 : index
    %0 = vector.load %arg0[%c0, %c0_0, %c0_1] : memref<8x2x4xf32, #tpu.memory_space<vmem>>, vector<8x2x4xf32>
    %1 = vector.shape_cast %0 : vector<8x2x4xf32> to vector<16x4xf32>
    %c0_2 = arith.constant 0 : index
    %c0_3 = arith.constant 0 : index
    %2 = vector.load %arg1[%c0_2, %c0_3] : memref<4x8xf32, #tpu.memory_space<vmem>>, vector<4x8xf32>
    %cst = arith.constant dense<0.000000e+00> : vector<16x8xf32>
    %3 = tpu.matmul %1, %2, %cst {dimension_numbers = #tpu.dot_dimension_numbers<[1], [0], [0], [1], [0, 0, 1, 1], [], []>} : vector<16x4xf32>, vector<4x8xf32>, vector<16x8xf32> -> vector<16x8xf32>
    %c0_4 = arith.constant 0 : index
    %c0_5 = arith.constant 0 : index
    %4 = vector.load %arg3[%c0_4, %c0_5] : memref<1x8xf32, #tpu.memory_space<vmem>>, vector<1x8xf32>
    %5 = vector.broadcast %4 : vector<1x8xf32> to vector<16x8xf32>
    %6 = arith.addf %3, %5 : vector<16x8xf32>
    %7 = vector.shape_cast %6 : vector<16x8xf32> to vector<8x2x8xf32>
    %c0_6 = arith.constant 0 : index
    %c0_7 = arith.constant 0 : index
    %8 = vector.load %arg2[%c0_6, %c0_7] : memref<2x8xf32, #tpu.memory_space<vmem>>, vector<2x8xf32>
    %c0_8 = arith.constant 0 : index
    %c0_9 = arith.constant 0 : index
    %9 = vector.load %arg4[%c0_8, %c0_9] : memref<2x128xf32, #tpu.memory_space<vmem>>, vector<2x128xf32>
    %cst_10 = arith.constant 0.000000e+00 : f32
    %10 = vector.broadcast %cst_10 : f32 to vector<2x2xf32>
    %cst_11 = arith.constant 0.000000e+00 : f32
    %11 = vector.broadcast %cst_11 : f32 to vector<2x2xf32>
    %12 = vector.extract_strided_slice %7 {offsets = [0, 0, 0], sizes = [1, 2, 8], strides = [1, 1, 1]} : vector<8x2x8xf32> to vector<1x2x8xf32>
    %13 = vector.shape_cast %12 : vector<1x2x8xf32> to vector<2x8xf32>
    %14 = vector.extract_strided_slice %10 {offsets = [0, 0], sizes = [2, 1], strides = [1, 1]} : vector<2x2xf32> to vector<2x1xf32>
    %15 = vector.extract_strided_slice %8 {offsets = [0, 0], sizes = [1, 8], strides = [1, 1]} : vector<2x8xf32> to vector<1x8xf32>
    %16 = vector.broadcast %14 : vector<2x1xf32> to vector<2x8xf32>
    %17 = vector.broadcast %15 : vector<1x8xf32> to vector<2x8xf32>
    %18 = arith.mulf %16, %17 : vector<2x8xf32>
    %19 = arith.addf %13, %18 : vector<2x8xf32>
    %20 = vector.extract_strided_slice %10 {offsets = [0, 1], sizes = [2, 1], strides = [1, 1]} : vector<2x2xf32> to vector<2x1xf32>
    %21 = vector.extract_strided_slice %8 {offsets = [1, 0], sizes = [1, 8], strides = [1, 1]} : vector<2x8xf32> to vector<1x8xf32>
    %22 = vector.broadcast %20 : vector<2x1xf32> to vector<2x8xf32>
    %23 = vector.broadcast %21 : vector<1x8xf32> to vector<2x8xf32>
    %24 = arith.mulf %22, %23 : vector<2x8xf32>
    %25 = arith.addf %19, %24 : vector<2x8xf32>
    %26 = vector.extract_strided_slice %25 {offsets = [0, 0], sizes = [2, 6], strides = [1, 1]} : vector<2x8xf32> to vector<2x6xf32>
    %27 = arith.negf %26 : vector<2x6xf32>
    %28 = math.exp %27 : vector<2x6xf32>
    %cst_12 = arith.constant 1.000000e+00 : f32
    %29 = vector.broadcast %cst_12 : f32 to vector<2x6xf32>
    %30 = arith.addf %29, %28 : vector<2x6xf32>
    %31 = arith.divf %29, %30 : vector<2x6xf32>
    %32 = vector.extract_strided_slice %25 {offsets = [0, 6], sizes = [2, 2], strides = [1, 1]} : vector<2x8xf32> to vector<2x2xf32>
    %33 = math.tanh %32 : vector<2x2xf32>
    %34 = vector.extract_strided_slice %31 {offsets = [0, 0], sizes = [2, 2], strides = [1, 1]} : vector<2x6xf32> to vector<2x2xf32>
    %35 = vector.extract_strided_slice %31 {offsets = [0, 2], sizes = [2, 2], strides = [1, 1]} : vector<2x6xf32> to vector<2x2xf32>
    %36 = vector.extract_strided_slice %31 {offsets = [0, 4], sizes = [2, 2], strides = [1, 1]} : vector<2x6xf32> to vector<2x2xf32>
    %37 = arith.mulf %35, %11 : vector<2x2xf32>
    %38 = arith.mulf %34, %33 : vector<2x2xf32>
    %39 = arith.addf %37, %38 : vector<2x2xf32>
    %40 = math.tanh %39 : vector<2x2xf32>
    %41 = arith.mulf %36, %40 : vector<2x2xf32>
    %42 = vector.extract_strided_slice %7 {offsets = [1, 0, 0], sizes = [1, 2, 8], strides = [1, 1, 1]} : vector<8x2x8xf32> to vector<1x2x8xf32>
    %43 = vector.shape_cast %42 : vector<1x2x8xf32> to vector<2x8xf32>
    %44 = vector.extract_strided_slice %41 {offsets = [0, 0], sizes = [2, 1], strides = [1, 1]} : vector<2x2xf32> to vector<2x1xf32>
    %45 = vector.extract_strided_slice %8 {offsets = [0, 0], sizes = [1, 8], strides = [1, 1]} : vector<2x8xf32> to vector<1x8xf32>
    %46 = vector.broadcast %44 : vector<2x1xf32> to vector<2x8xf32>
    %47 = vector.broadcast %45 : vector<1x8xf32> to vector<2x8xf32>
    %48 = arith.mulf %46, %47 : vector<2x8xf32>
    %49 = arith.addf %43, %48 : vector<2x8xf32>
    %50 = vector.extract_strided_slice %41 {offsets = [0, 1], sizes = [2, 1], strides = [1, 1]} : vector<2x2xf32> to vector<2x1xf32>
    %51 = vector.extract_strided_slice %8 {offsets = [1, 0], sizes = [1, 8], strides = [1, 1]} : vector<2x8xf32> to vector<1x8xf32>
    %52 = vector.broadcast %50 : vector<2x1xf32> to vector<2x8xf32>
    %53 = vector.broadcast %51 : vector<1x8xf32> to vector<2x8xf32>
    %54 = arith.mulf %52, %53 : vector<2x8xf32>
    %55 = arith.addf %49, %54 : vector<2x8xf32>
    %56 = vector.extract_strided_slice %55 {offsets = [0, 0], sizes = [2, 6], strides = [1, 1]} : vector<2x8xf32> to vector<2x6xf32>
    %57 = arith.negf %56 : vector<2x6xf32>
    %58 = math.exp %57 : vector<2x6xf32>
    %cst_13 = arith.constant 1.000000e+00 : f32
    %59 = vector.broadcast %cst_13 : f32 to vector<2x6xf32>
    %60 = arith.addf %59, %58 : vector<2x6xf32>
    %61 = arith.divf %59, %60 : vector<2x6xf32>
    %62 = vector.extract_strided_slice %55 {offsets = [0, 6], sizes = [2, 2], strides = [1, 1]} : vector<2x8xf32> to vector<2x2xf32>
    %63 = math.tanh %62 : vector<2x2xf32>
    %64 = vector.extract_strided_slice %61 {offsets = [0, 0], sizes = [2, 2], strides = [1, 1]} : vector<2x6xf32> to vector<2x2xf32>
    %65 = vector.extract_strided_slice %61 {offsets = [0, 2], sizes = [2, 2], strides = [1, 1]} : vector<2x6xf32> to vector<2x2xf32>
    %66 = vector.extract_strided_slice %61 {offsets = [0, 4], sizes = [2, 2], strides = [1, 1]} : vector<2x6xf32> to vector<2x2xf32>
    %67 = arith.mulf %65, %39 : vector<2x2xf32>
    %68 = arith.mulf %64, %63 : vector<2x2xf32>
    %69 = arith.addf %67, %68 : vector<2x2xf32>
    %70 = math.tanh %69 : vector<2x2xf32>
    %71 = arith.mulf %66, %70 : vector<2x2xf32>
    %72 = vector.extract_strided_slice %7 {offsets = [2, 0, 0], sizes = [1, 2, 8], strides = [1, 1, 1]} : vector<8x2x8xf32> to vector<1x2x8xf32>
    %73 = vector.shape_cast %72 : vector<1x2x8xf32> to vector<2x8xf32>
    %74 = vector.extract_strided_slice %71 {offsets = [0, 0], sizes = [2, 1], strides = [1, 1]} : vector<2x2xf32> to vector<2x1xf32>
    %75 = vector.extract_strided_slice %8 {offsets = [0, 0], sizes = [1, 8], strides = [1, 1]} : vector<2x8xf32> to vector<1x8xf32>
    %76 = vector.broadcast %74 : vector<2x1xf32> to vector<2x8xf32>
    %77 = vector.broadcast %75 : vector<1x8xf32> to vector<2x8xf32>
    %78 = arith.mulf %76, %77 : vector<2x8xf32>
    %79 = arith.addf %73, %78 : vector<2x8xf32>
    %80 = vector.extract_strided_slice %71 {offsets = [0, 1], sizes = [2, 1], strides = [1, 1]} : vector<2x2xf32> to vector<2x1xf32>
    %81 = vector.extract_strided_slice %8 {offsets = [1, 0], sizes = [1, 8], strides = [1, 1]} : vector<2x8xf32> to vector<1x8xf32>
    %82 = vector.broadcast %80 : vector<2x1xf32> to vector<2x8xf32>
    %83 = vector.broadcast %81 : vector<1x8xf32> to vector<2x8xf32>
    %84 = arith.mulf %82, %83 : vector<2x8xf32>
    %85 = arith.addf %79, %84 : vector<2x8xf32>
    %86 = vector.extract_strided_slice %85 {offsets = [0, 0], sizes = [2, 6], strides = [1, 1]} : vector<2x8xf32> to vector<2x6xf32>
    %87 = arith.negf %86 : vector<2x6xf32>
    %88 = math.exp %87 : vector<2x6xf32>
    %cst_14 = arith.constant 1.000000e+00 : f32
    %89 = vector.broadcast %cst_14 : f32 to vector<2x6xf32>
    %90 = arith.addf %89, %88 : vector<2x6xf32>
    %91 = arith.divf %89, %90 : vector<2x6xf32>
    %92 = vector.extract_strided_slice %85 {offsets = [0, 6], sizes = [2, 2], strides = [1, 1]} : vector<2x8xf32> to vector<2x2xf32>
    %93 = math.tanh %92 : vector<2x2xf32>
    %94 = vector.extract_strided_slice %91 {offsets = [0, 0], sizes = [2, 2], strides = [1, 1]} : vector<2x6xf32> to vector<2x2xf32>
    %95 = vector.extract_strided_slice %91 {offsets = [0, 2], sizes = [2, 2], strides = [1, 1]} : vector<2x6xf32> to vector<2x2xf32>
    %96 = vector.extract_strided_slice %91 {offsets = [0, 4], sizes = [2, 2], strides = [1, 1]} : vector<2x6xf32> to vector<2x2xf32>
    %97 = arith.mulf %95, %69 : vector<2x2xf32>
    %98 = arith.mulf %94, %93 : vector<2x2xf32>
    %99 = arith.addf %97, %98 : vector<2x2xf32>
    %100 = math.tanh %99 : vector<2x2xf32>
    %101 = arith.mulf %96, %100 : vector<2x2xf32>
    %102 = vector.extract_strided_slice %7 {offsets = [3, 0, 0], sizes = [1, 2, 8], strides = [1, 1, 1]} : vector<8x2x8xf32> to vector<1x2x8xf32>
    %103 = vector.shape_cast %102 : vector<1x2x8xf32> to vector<2x8xf32>
    %104 = vector.extract_strided_slice %101 {offsets = [0, 0], sizes = [2, 1], strides = [1, 1]} : vector<2x2xf32> to vector<2x1xf32>
    %105 = vector.extract_strided_slice %8 {offsets = [0, 0], sizes = [1, 8], strides = [1, 1]} : vector<2x8xf32> to vector<1x8xf32>
    %106 = vector.broadcast %104 : vector<2x1xf32> to vector<2x8xf32>
    %107 = vector.broadcast %105 : vector<1x8xf32> to vector<2x8xf32>
    %108 = arith.mulf %106, %107 : vector<2x8xf32>
    %109 = arith.addf %103, %108 : vector<2x8xf32>
    %110 = vector.extract_strided_slice %101 {offsets = [0, 1], sizes = [2, 1], strides = [1, 1]} : vector<2x2xf32> to vector<2x1xf32>
    %111 = vector.extract_strided_slice %8 {offsets = [1, 0], sizes = [1, 8], strides = [1, 1]} : vector<2x8xf32> to vector<1x8xf32>
    %112 = vector.broadcast %110 : vector<2x1xf32> to vector<2x8xf32>
    %113 = vector.broadcast %111 : vector<1x8xf32> to vector<2x8xf32>
    %114 = arith.mulf %112, %113 : vector<2x8xf32>
    %115 = arith.addf %109, %114 : vector<2x8xf32>
    %116 = vector.extract_strided_slice %115 {offsets = [0, 0], sizes = [2, 6], strides = [1, 1]} : vector<2x8xf32> to vector<2x6xf32>
    %117 = arith.negf %116 : vector<2x6xf32>
    %118 = math.exp %117 : vector<2x6xf32>
    %cst_15 = arith.constant 1.000000e+00 : f32
    %119 = vector.broadcast %cst_15 : f32 to vector<2x6xf32>
    %120 = arith.addf %119, %118 : vector<2x6xf32>
    %121 = arith.divf %119, %120 : vector<2x6xf32>
    %122 = vector.extract_strided_slice %115 {offsets = [0, 6], sizes = [2, 2], strides = [1, 1]} : vector<2x8xf32> to vector<2x2xf32>
    %123 = math.tanh %122 : vector<2x2xf32>
    %124 = vector.extract_strided_slice %121 {offsets = [0, 0], sizes = [2, 2], strides = [1, 1]} : vector<2x6xf32> to vector<2x2xf32>
    %125 = vector.extract_strided_slice %121 {offsets = [0, 2], sizes = [2, 2], strides = [1, 1]} : vector<2x6xf32> to vector<2x2xf32>
    %126 = vector.extract_strided_slice %121 {offsets = [0, 4], sizes = [2, 2], strides = [1, 1]} : vector<2x6xf32> to vector<2x2xf32>
    %127 = arith.mulf %125, %99 : vector<2x2xf32>
    %128 = arith.mulf %124, %123 : vector<2x2xf32>
    %129 = arith.addf %127, %128 : vector<2x2xf32>
    %130 = math.tanh %129 : vector<2x2xf32>
    %131 = arith.mulf %126, %130 : vector<2x2xf32>
    %132 = vector.extract_strided_slice %7 {offsets = [4, 0, 0], sizes = [1, 2, 8], strides = [1, 1, 1]} : vector<8x2x8xf32> to vector<1x2x8xf32>
    %133 = vector.shape_cast %132 : vector<1x2x8xf32> to vector<2x8xf32>
    %134 = vector.extract_strided_slice %131 {offsets = [0, 0], sizes = [2, 1], strides = [1, 1]} : vector<2x2xf32> to vector<2x1xf32>
    %135 = vector.extract_strided_slice %8 {offsets = [0, 0], sizes = [1, 8], strides = [1, 1]} : vector<2x8xf32> to vector<1x8xf32>
    %136 = vector.broadcast %134 : vector<2x1xf32> to vector<2x8xf32>
    %137 = vector.broadcast %135 : vector<1x8xf32> to vector<2x8xf32>
    %138 = arith.mulf %136, %137 : vector<2x8xf32>
    %139 = arith.addf %133, %138 : vector<2x8xf32>
    %140 = vector.extract_strided_slice %131 {offsets = [0, 1], sizes = [2, 1], strides = [1, 1]} : vector<2x2xf32> to vector<2x1xf32>
    %141 = vector.extract_strided_slice %8 {offsets = [1, 0], sizes = [1, 8], strides = [1, 1]} : vector<2x8xf32> to vector<1x8xf32>
    %142 = vector.broadcast %140 : vector<2x1xf32> to vector<2x8xf32>
    %143 = vector.broadcast %141 : vector<1x8xf32> to vector<2x8xf32>
    %144 = arith.mulf %142, %143 : vector<2x8xf32>
    %145 = arith.addf %139, %144 : vector<2x8xf32>
    %146 = vector.extract_strided_slice %145 {offsets = [0, 0], sizes = [2, 6], strides = [1, 1]} : vector<2x8xf32> to vector<2x6xf32>
    %147 = arith.negf %146 : vector<2x6xf32>
    %148 = math.exp %147 : vector<2x6xf32>
    %cst_16 = arith.constant 1.000000e+00 : f32
    %149 = vector.broadcast %cst_16 : f32 to vector<2x6xf32>
    %150 = arith.addf %149, %148 : vector<2x6xf32>
    %151 = arith.divf %149, %150 : vector<2x6xf32>
    %152 = vector.extract_strided_slice %145 {offsets = [0, 6], sizes = [2, 2], strides = [1, 1]} : vector<2x8xf32> to vector<2x2xf32>
    %153 = math.tanh %152 : vector<2x2xf32>
    %154 = vector.extract_strided_slice %151 {offsets = [0, 0], sizes = [2, 2], strides = [1, 1]} : vector<2x6xf32> to vector<2x2xf32>
    %155 = vector.extract_strided_slice %151 {offsets = [0, 2], sizes = [2, 2], strides = [1, 1]} : vector<2x6xf32> to vector<2x2xf32>
    %156 = vector.extract_strided_slice %151 {offsets = [0, 4], sizes = [2, 2], strides = [1, 1]} : vector<2x6xf32> to vector<2x2xf32>
    %157 = arith.mulf %155, %129 : vector<2x2xf32>
    %158 = arith.mulf %154, %153 : vector<2x2xf32>
    %159 = arith.addf %157, %158 : vector<2x2xf32>
    %160 = math.tanh %159 : vector<2x2xf32>
    %161 = arith.mulf %156, %160 : vector<2x2xf32>
    %162 = vector.extract_strided_slice %7 {offsets = [5, 0, 0], sizes = [1, 2, 8], strides = [1, 1, 1]} : vector<8x2x8xf32> to vector<1x2x8xf32>
    %163 = vector.shape_cast %162 : vector<1x2x8xf32> to vector<2x8xf32>
    %164 = vector.extract_strided_slice %161 {offsets = [0, 0], sizes = [2, 1], strides = [1, 1]} : vector<2x2xf32> to vector<2x1xf32>
    %165 = vector.extract_strided_slice %8 {offsets = [0, 0], sizes = [1, 8], strides = [1, 1]} : vector<2x8xf32> to vector<1x8xf32>
    %166 = vector.broadcast %164 : vector<2x1xf32> to vector<2x8xf32>
    %167 = vector.broadcast %165 : vector<1x8xf32> to vector<2x8xf32>
    %168 = arith.mulf %166, %167 : vector<2x8xf32>
    %169 = arith.addf %163, %168 : vector<2x8xf32>
    %170 = vector.extract_strided_slice %161 {offsets = [0, 1], sizes = [2, 1], strides = [1, 1]} : vector<2x2xf32> to vector<2x1xf32>
    %171 = vector.extract_strided_slice %8 {offsets = [1, 0], sizes = [1, 8], strides = [1, 1]} : vector<2x8xf32> to vector<1x8xf32>
    %172 = vector.broadcast %170 : vector<2x1xf32> to vector<2x8xf32>
    %173 = vector.broadcast %171 : vector<1x8xf32> to vector<2x8xf32>
    %174 = arith.mulf %172, %173 : vector<2x8xf32>
    %175 = arith.addf %169, %174 : vector<2x8xf32>
    %176 = vector.extract_strided_slice %175 {offsets = [0, 0], sizes = [2, 6], strides = [1, 1]} : vector<2x8xf32> to vector<2x6xf32>
    %177 = arith.negf %176 : vector<2x6xf32>
    %178 = math.exp %177 : vector<2x6xf32>
    %cst_17 = arith.constant 1.000000e+00 : f32
    %179 = vector.broadcast %cst_17 : f32 to vector<2x6xf32>
    %180 = arith.addf %179, %178 : vector<2x6xf32>
    %181 = arith.divf %179, %180 : vector<2x6xf32>
    %182 = vector.extract_strided_slice %175 {offsets = [0, 6], sizes = [2, 2], strides = [1, 1]} : vector<2x8xf32> to vector<2x2xf32>
    %183 = math.tanh %182 : vector<2x2xf32>
    %184 = vector.extract_strided_slice %181 {offsets = [0, 0], sizes = [2, 2], strides = [1, 1]} : vector<2x6xf32> to vector<2x2xf32>
    %185 = vector.extract_strided_slice %181 {offsets = [0, 2], sizes = [2, 2], strides = [1, 1]} : vector<2x6xf32> to vector<2x2xf32>
    %186 = vector.extract_strided_slice %181 {offsets = [0, 4], sizes = [2, 2], strides = [1, 1]} : vector<2x6xf32> to vector<2x2xf32>
    %187 = arith.mulf %185, %159 : vector<2x2xf32>
    %188 = arith.mulf %184, %183 : vector<2x2xf32>
    %189 = arith.addf %187, %188 : vector<2x2xf32>
    %190 = math.tanh %189 : vector<2x2xf32>
    %191 = arith.mulf %186, %190 : vector<2x2xf32>
    %192 = vector.extract_strided_slice %7 {offsets = [6, 0, 0], sizes = [1, 2, 8], strides = [1, 1, 1]} : vector<8x2x8xf32> to vector<1x2x8xf32>
    %193 = vector.shape_cast %192 : vector<1x2x8xf32> to vector<2x8xf32>
    %194 = vector.extract_strided_slice %191 {offsets = [0, 0], sizes = [2, 1], strides = [1, 1]} : vector<2x2xf32> to vector<2x1xf32>
    %195 = vector.extract_strided_slice %8 {offsets = [0, 0], sizes = [1, 8], strides = [1, 1]} : vector<2x8xf32> to vector<1x8xf32>
    %196 = vector.broadcast %194 : vector<2x1xf32> to vector<2x8xf32>
    %197 = vector.broadcast %195 : vector<1x8xf32> to vector<2x8xf32>
    %198 = arith.mulf %196, %197 : vector<2x8xf32>
    %199 = arith.addf %193, %198 : vector<2x8xf32>
    %200 = vector.extract_strided_slice %191 {offsets = [0, 1], sizes = [2, 1], strides = [1, 1]} : vector<2x2xf32> to vector<2x1xf32>
    %201 = vector.extract_strided_slice %8 {offsets = [1, 0], sizes = [1, 8], strides = [1, 1]} : vector<2x8xf32> to vector<1x8xf32>
    %202 = vector.broadcast %200 : vector<2x1xf32> to vector<2x8xf32>
    %203 = vector.broadcast %201 : vector<1x8xf32> to vector<2x8xf32>
    %204 = arith.mulf %202, %203 : vector<2x8xf32>
    %205 = arith.addf %199, %204 : vector<2x8xf32>
    %206 = vector.extract_strided_slice %205 {offsets = [0, 0], sizes = [2, 6], strides = [1, 1]} : vector<2x8xf32> to vector<2x6xf32>
    %207 = arith.negf %206 : vector<2x6xf32>
    %208 = math.exp %207 : vector<2x6xf32>
    %cst_18 = arith.constant 1.000000e+00 : f32
    %209 = vector.broadcast %cst_18 : f32 to vector<2x6xf32>
    %210 = arith.addf %209, %208 : vector<2x6xf32>
    %211 = arith.divf %209, %210 : vector<2x6xf32>
    %212 = vector.extract_strided_slice %205 {offsets = [0, 6], sizes = [2, 2], strides = [1, 1]} : vector<2x8xf32> to vector<2x2xf32>
    %213 = math.tanh %212 : vector<2x2xf32>
    %214 = vector.extract_strided_slice %211 {offsets = [0, 0], sizes = [2, 2], strides = [1, 1]} : vector<2x6xf32> to vector<2x2xf32>
    %215 = vector.extract_strided_slice %211 {offsets = [0, 2], sizes = [2, 2], strides = [1, 1]} : vector<2x6xf32> to vector<2x2xf32>
    %216 = vector.extract_strided_slice %211 {offsets = [0, 4], sizes = [2, 2], strides = [1, 1]} : vector<2x6xf32> to vector<2x2xf32>
    %217 = arith.mulf %215, %189 : vector<2x2xf32>
    %218 = arith.mulf %214, %213 : vector<2x2xf32>
    %219 = arith.addf %217, %218 : vector<2x2xf32>
    %220 = math.tanh %219 : vector<2x2xf32>
    %221 = arith.mulf %216, %220 : vector<2x2xf32>
    %222 = vector.extract_strided_slice %7 {offsets = [7, 0, 0], sizes = [1, 2, 8], strides = [1, 1, 1]} : vector<8x2x8xf32> to vector<1x2x8xf32>
    %223 = vector.shape_cast %222 : vector<1x2x8xf32> to vector<2x8xf32>
    %224 = vector.extract_strided_slice %221 {offsets = [0, 0], sizes = [2, 1], strides = [1, 1]} : vector<2x2xf32> to vector<2x1xf32>
    %225 = vector.extract_strided_slice %8 {offsets = [0, 0], sizes = [1, 8], strides = [1, 1]} : vector<2x8xf32> to vector<1x8xf32>
    %226 = vector.broadcast %224 : vector<2x1xf32> to vector<2x8xf32>
    %227 = vector.broadcast %225 : vector<1x8xf32> to vector<2x8xf32>
    %228 = arith.mulf %226, %227 : vector<2x8xf32>
    %229 = arith.addf %223, %228 : vector<2x8xf32>
    %230 = vector.extract_strided_slice %221 {offsets = [0, 1], sizes = [2, 1], strides = [1, 1]} : vector<2x2xf32> to vector<2x1xf32>
    %231 = vector.extract_strided_slice %8 {offsets = [1, 0], sizes = [1, 8], strides = [1, 1]} : vector<2x8xf32> to vector<1x8xf32>
    %232 = vector.broadcast %230 : vector<2x1xf32> to vector<2x8xf32>
    %233 = vector.broadcast %231 : vector<1x8xf32> to vector<2x8xf32>
    %234 = arith.mulf %232, %233 : vector<2x8xf32>
    %235 = arith.addf %229, %234 : vector<2x8xf32>
    %236 = vector.extract_strided_slice %235 {offsets = [0, 0], sizes = [2, 6], strides = [1, 1]} : vector<2x8xf32> to vector<2x6xf32>
    %237 = arith.negf %236 : vector<2x6xf32>
    %238 = math.exp %237 : vector<2x6xf32>
    %cst_19 = arith.constant 1.000000e+00 : f32
    %239 = vector.broadcast %cst_19 : f32 to vector<2x6xf32>
    %240 = arith.addf %239, %238 : vector<2x6xf32>
    %241 = arith.divf %239, %240 : vector<2x6xf32>
    %242 = vector.extract_strided_slice %235 {offsets = [0, 6], sizes = [2, 2], strides = [1, 1]} : vector<2x8xf32> to vector<2x2xf32>
    %243 = math.tanh %242 : vector<2x2xf32>
    %244 = vector.extract_strided_slice %241 {offsets = [0, 0], sizes = [2, 2], strides = [1, 1]} : vector<2x6xf32> to vector<2x2xf32>
    %245 = vector.extract_strided_slice %241 {offsets = [0, 2], sizes = [2, 2], strides = [1, 1]} : vector<2x6xf32> to vector<2x2xf32>
    %246 = vector.extract_strided_slice %241 {offsets = [0, 4], sizes = [2, 2], strides = [1, 1]} : vector<2x6xf32> to vector<2x2xf32>
    %247 = arith.mulf %245, %219 : vector<2x2xf32>
    %248 = arith.mulf %244, %243 : vector<2x2xf32>
    %249 = arith.addf %247, %248 : vector<2x2xf32>
    %250 = math.tanh %249 : vector<2x2xf32>
    %251 = arith.mulf %246, %250 : vector<2x2xf32>
    %cst_20 = arith.constant 0.000000e+00 : f32
    %252 = vector.broadcast %cst_20 : f32 to vector<2x2xf32>
    %253 = arith.maximumf %251, %252 : vector<2x2xf32>
    %c0_21 = arith.constant 0 : index
    %c0_22 = arith.constant 0 : index
    %254 = vector.load %arg5[%c0_21, %c0_22] : memref<1x128xf32, #tpu.memory_space<vmem>>, vector<1x128xf32>
    %255 = vector.extract_strided_slice %253 {offsets = [0, 0], sizes = [2, 1], strides = [1, 1]} : vector<2x2xf32> to vector<2x1xf32>
    %256 = vector.extract_strided_slice %9 {offsets = [0, 0], sizes = [1, 128], strides = [1, 1]} : vector<2x128xf32> to vector<1x128xf32>
    %257 = vector.broadcast %255 : vector<2x1xf32> to vector<2x128xf32>
    %258 = vector.broadcast %256 : vector<1x128xf32> to vector<2x128xf32>
    %259 = arith.mulf %257, %258 : vector<2x128xf32>
    %260 = vector.broadcast %254 : vector<1x128xf32> to vector<2x128xf32>
    %261 = arith.addf %260, %259 : vector<2x128xf32>
    %262 = vector.extract_strided_slice %253 {offsets = [0, 1], sizes = [2, 1], strides = [1, 1]} : vector<2x2xf32> to vector<2x1xf32>
    %263 = vector.extract_strided_slice %9 {offsets = [1, 0], sizes = [1, 128], strides = [1, 1]} : vector<2x128xf32> to vector<1x128xf32>
    %264 = vector.broadcast %262 : vector<2x1xf32> to vector<2x128xf32>
    %265 = vector.broadcast %263 : vector<1x128xf32> to vector<2x128xf32>
    %266 = arith.mulf %264, %265 : vector<2x128xf32>
    %267 = arith.addf %261, %266 : vector<2x128xf32>
    %cst_23 = arith.constant 0.000000e+00 : f32
    %268 = vector.broadcast %cst_23 : f32 to vector<2x128xf32>
    %269 = arith.maximumf %267, %268 : vector<2x128xf32>
    %c0_24 = arith.constant 0 : index
    %c0_25 = arith.constant 0 : index
    %270 = vector.load %arg6[%c0_24, %c0_25] : memref<128x50xf32, #tpu.memory_space<vmem>>, vector<128x50xf32>
    %cst_26 = arith.constant dense<0.000000e+00> : vector<2x50xf32>
    %271 = tpu.matmul %269, %270, %cst_26 {dimension_numbers = #tpu.dot_dimension_numbers<[1], [0], [0], [1], [0, 0, 1, 1], [], []>} : vector<2x128xf32>, vector<128x50xf32>, vector<2x50xf32> -> vector<2x50xf32>
    %c0_27 = arith.constant 0 : index
    %c0_28 = arith.constant 0 : index
    %272 = vector.load %arg7[%c0_27, %c0_28] : memref<1x50xf32, #tpu.memory_space<vmem>>, vector<1x50xf32>
    %273 = vector.broadcast %272 : vector<1x50xf32> to vector<2x50xf32>
    %274 = arith.addf %271, %273 : vector<2x50xf32>
    %c0_29 = arith.constant 0 : index
    %c0_30 = arith.constant 0 : index
    %275 = vector.load %arg8[%c0_29, %c0_30] : memref<2x50xf32, #tpu.memory_space<vmem>>, vector<2x50xf32>
    tpu.vector_store %arg8[%c0_29, %c0_30], %274 {strides = array<i32>} : memref<2x50xf32, #tpu.memory_space<vmem>>, vector<2x50xf32>,
    return
  }
}

</mosaic_0001>

<bundles_post_ra>
// kernel: tpu_custom_call.1
= control target key start
LH: loop header
LB: loop body
LE: loop exit
PB: predicated region body
PF: predicated region fallthrough
CT: control target
= control target key end

     0   :  { %vm93_vm0 = vcmask 1043456   ;;  %v59_v1 = vlaneseq  ;;  %v969_v7 = vmov 1983009808   ;;  %s1231_s0 = inlined_call_operand.vmem [shape: f32[8,2,4], index: 0, kind: input, shape index: {}]   ;;  %s1232_s1 = inlined_call_operand.vmem [shape: f32[4,8], index: 1, kind: input, shape index: {}]   ;;  %s1233_s2 = inlined_call_operand.vmem [shape: f32[2,8], index: 2, kind: input, shape index: {}]   ;;  %s1234_s3 = inlined_call_operand.vmem [shape: f32[1,8], index: 3, kind: input, shape index: {}]   ;;  %s1235_s4 = inlined_call_operand.vmem [shape: f32[2,128], index: 4, kind: input, shape index: {}]   ;;  %s1236_s5 = inlined_call_operand.vmem [shape: f32[1,128], index: 5, kind: input, shape index: {}]   ;;  %s1237_s6 = inlined_call_operand.vmem [shape: f32[128,50], index: 6, kind: input, shape index: {}]   ;;  %s1238_s7 = inlined_call_operand.vmem [shape: f32[1,50], index: 7, kind: input, shape index: {}]   ;;  %s1239_s8 = inlined_call_operand.hbm [shape: f32[2,50], index: 8, kind: output, shape index: {}]  }
   0x1   :  { %v38_v0 = vld [vmem:[%s1232_s1] sm:$0xf]  ;;  %v32_v4 = vld [vmem:[%s1231_s0 + $0x4] sm:$0x3]  ;;  %v33_v5 = vld [vmem:[%s1231_s0 + $0x6] sm:$0x3]  ;;  %v57_v8 = vunpack.c.l.s4 %v969_v7 }
   0x2   :  { %798 = vmatprep.subr.msk.mxu0 %vm93_vm0, %v38_v0  ;;  %v30_v2 = vld [vmem:[%s1231_s0] sm:$0x3]  ;;  %v31_v3 = vld [vmem:[%s1231_s0 + $0x2] sm:$0x3]  ;;  %v34_v6 = vld [vmem:[%s1231_s0 + $0x8] sm:$0x3] }
   0x3   :  { %799 = vmatpush3.msk.msra.mxu0 %vm93_vm0, %v38_v0  ;;  %v1042_v9 = vshrl.u32 %v59_v1, 7  ;;  %v35_v10 = vld [vmem:[%s1231_s0 + $0xa] sm:$0x3]  ;;  %v36_v11 = vld [vmem:[%s1231_s0 + $0xc] sm:$0x3]  ;;  %v54_v12 = vcombine.low %v30_v2, %v31_v3 }
   0x4   :  { %v37_v13 = vld [vmem:[%s1231_s0 + $0xe] sm:$0x3] }
   0x5   :  { %13 = vsyncpa [#allocation3], 0  ;;  %v55_v14 = vcombine.low %v32_v4, %v33_v5  ;;  %v58_v15 = vunpack.c.0.s8 %v57_v8  ;;  %v71_v16 = vcombine.low %v34_v6, %v35_v10  ;;  %v72_v17 = vcombine.low %v36_v11, %v37_v13  ;;  %v216_v26 = vld [vmem:[%s1233_s2] sm:$0x3]  ;;  %s970_s2 = smov 122   ;;  %s978_s13 = smov [#allocation2]  }
   0x6   :  { %vm88_vm1 = vcmask 31744   ;;  %v220_v25 = vsub.s32 0, %v1042_v9  ;;  %v226_v27 = vsub.s32 1, %v1042_v9  ;;  %v764_v28 = vld [vmem:[%s1234_s3] ss:$0 sm:$0xff]  ;;  %s971_s3 = smov 2  }
   0x7   :  { %v1054_v18 = vsub.s32 %v58_v15, %v1042_v9  ;;  %v972_v50 = vmov 5   ;;  %v973_v51 = vmov 4   ;;  %v974_v55 = vmov 269488144   ;;  %s756_s14 = sshll.u32 %s978_s13, 4  ;;  %s757_s14 = int_to_ptr.vmem [resolvable:$true] %s756_s14 }
   0x8   :  { %v1070_v29 = vrot.slane %v216_v26, %v220_v25  ;;  %v1074_v31 = vrot.slane %v216_v26, %v226_v27  ;;  %873 = vset.pattern.permute.xlu0 %v972_v50  ;;  %872 = vset.pattern.permute.xlu1 %v973_v51  ;;  %v260_v56 = vunpack.c.l.s4 %v974_v55  ;;  %vm976_vm2 = vmmov 0   ;;  %s945_s1 = scalar_lea.vmem %s757_s14, 32  ;;  %p950_p1 = scmp.lt.s32.totalorder %s757_s14, %s757_s14 }
   0x9   :  { %v62_v19 = vrot.slane %v54_v12, %v1054_v18  ;;  %v69_v20 = vrot.slane %v55_v14, %v1054_v18  ;;  %v79_v21 = vrot.slane %v71_v16, %v1054_v18  ;;  %v86_v22 = vrot.slane %v72_v17, %v1054_v18  ;;  %p946_p0 = scmp.ne.s32.totalorder %s757_s14, %s945_s1  ;;  %p951_p2 = scmp.lt.s32.totalorder %s945_s1, %s945_s1 }
   0xa   :  { %v222_v35 = vmul.f32 0.0, %v1070_v29  ;;  %v228_v37 = vmul.f32 0.0, %v1074_v31  ;;  %v261_v57 = vunpack.c.0.s8 %v260_v56  ;;  %vm748_vm3 = vcmask 402432  }
   0xb   :  { %v70_v23 = vcombine.low %v62_v19, %v69_v20  ;;  %v87_v24 = vcombine.low %v79_v21, %v86_v22  ;;  %p952_p3 = por %p951_p2, %p950_p1 }
   0xc   :  { %v1090_v58 = vsub.s32 %v261_v57, %v1042_v9 }
   0xd   :  { %800 = vmatprep.mubr.msk.f32.mxu0 %vm88_vm1, %v70_v23  ;;  %p953_p4 = pnand %p952_p3, %p946_p0 }
   0xe   :  { %801 = vmatmul.mubr.msk.f32.vlgmr.msra.gmra.mrb[0].mxu0 %vm88_vm1, %v87_v24 }
  0xe1   :  { %v802_v30 = vpop.f32.mrb[0].mxu0 }
  0xe2   :  { %v1076_v32 = vadd.f32 %v802_v30, %v764_v28  ;;  %v163_v33 = vpop.f32.mrb[1].mxu0 }
  0xe3   :  { %v1078_v34 = vadd.f32 %v764_v28, %v163_v33 }
  0xe5   :  { %v181_v36 = vrot.slane %v1078_v34, %v1054_v18  ;;  %v174_v19 = vcombine.high %v1078_v34, %v1078_v34 }
  0xe7   :  { %v223_v38 = vadd.f32 %v222_v35, %v181_v36  ;;  %v189_v63 = vcombine.high %v181_v36, %v181_v36  ;;  %v188_v24 = vrot.slane %v174_v19, %v1054_v18 }
  0xe9   :  { %v229_v39 = vadd.f32 %v228_v37, %v223_v38 }
  0xeb   :  { %881 = vtanh.f32 %v229_v39  ;;  %v768_v41 = vmul.f32 -1.442695, %v229_v39 }
  0xed   :  { %883 = vpow2.f32 %v768_v41 }
  0xf5   :  { %v882_v40 = vpop.eup %881 }
  0xf6   :  { %239 = vrot.lane.b32.xlu0 %v882_v40, %s970_s2 }
  0xf7   :  { %v884_v42 = vpop.eup %883 }
  0xf8   :  { %v233_v43 = vadd.f32 1.0, %v884_v42 }
  0xfa   :  { %885 = vrcp.f32 %v233_v43 }
 0x104   :  { %v886_v44 = vpop.eup %885 }
 0x105   :  { %v237_v47 = vmul.f32 0.0, %v886_v44 }
 0x168   :  { %v240_v45 = vpop.permute.xlu0 %239 }
 0x169   :  { %v242_v46 = vmul.f32 %v886_v44, %v240_v45 }
 0x16b   :  { %244 = vrot.lane.b32.xlu0 %v242_v46, %s971_s3 }
 0x1dd   :  { %v245_v48 = vpop.permute.xlu0 %244 }
 0x1de   :  { %v247_v49 = vadd.f32 %v245_v48, %v237_v47 }
 0x1e0   :  { %887 = vtanh.f32 %v247_v49 }
 0x1ea   :  { %v888_v52 = vpop.eup %887 }
 0x1eb   :  { %250 = vrot.lane.b32.xlu1 %v888_v52, %s971_s3 }
 0x25d   :  { %v251_v53 = vpop.permute.xlu1 %250 }
 0x25e   :  { %v253_v54 = vmul.f32 %v886_v44, %v251_v53  ;;  %v190_v53 = vcombine.high %v188_v24, %v188_v24 }
 0x260   :  { %269 = vperm.xlu0 %873, %v253_v54   ;;  %256 = vperm.xlu1 %872, %v253_v54  }
 0x2df   :  { %v270_v59 = vpop.permute.xlu0 %269  ;;  %v257_v60 = vpop.permute.xlu1 %256 }
 0x2e0   :  { %v278_v61 = vrot.slane %v270_v59, %v1090_v58  ;;  %v265_v62 = vrot.slane %v257_v60, %v1090_v58 }
 0x2e2   :  { %v266_v0 = vmul.f32 %v265_v62, %v1070_v29  ;;  %v279_v1 = vmul.f32 %v278_v61, %v1074_v31 }
 0x2e4   :  { %v267_v2 = vadd.f32 %v266_v0, %v189_v63 }
 0x2e6   :  { %v280_v3 = vadd.f32 %v279_v1, %v267_v2 }
 0x2e8   :  { %889 = vtanh.f32 %v280_v3  ;;  %v769_v5 = vmul.f32 -1.442695, %v280_v3 }
 0x2ea   :  { %891 = vpow2.f32 %v769_v5 }
 0x2f2   :  { %v890_v4 = vpop.eup %889 }
 0x2f3   :  { %290 = vrot.lane.b32.xlu1 %v890_v4, %s970_s2 }
 0x2f4   :  { %v892_v6 = vpop.eup %891 }
 0x2f5   :  { %v284_v7 = vadd.f32 1.0, %v892_v6 }
 0x2f7   :  { %893 = vrcp.f32 %v284_v7 }
 0x301   :  { %v894_v8 = vpop.eup %893 }
 0x302   :  { %v288_v12 = vmul.f32 %v894_v8, %v247_v49 }
 0x365   :  { %v291_v10 = vpop.permute.xlu1 %290 }
 0x366   :  { %v293_v11 = vmul.f32 %v894_v8, %v291_v10 }
 0x368   :  { %295 = vrot.lane.b32.xlu1 %v293_v11, %s971_s3 }
 0x3da   :  { %v296_v13 = vpop.permute.xlu1 %295 }
 0x3db   :  { %v298_v14 = vadd.f32 %v296_v13, %v288_v12  ;;  %v198_v13 = vrot.slane %v1076_v32, %v1054_v18 }
 0x3dd   :  { %895 = vtanh.f32 %v298_v14 }
 0x3e7   :  { %v896_v15 = vpop.eup %895 }
 0x3e8   :  { %301 = vrot.lane.b32.xlu0 %v896_v15, %s971_s3 }
 0x45a   :  { %v302_v16 = vpop.permute.xlu0 %301 }
 0x45b   :  { %v304_v17 = vmul.f32 %v894_v8, %v302_v16 }
 0x45d   :  { %320 = vperm.xlu0 %873, %v304_v17   ;;  %307 = vperm.xlu1 %872, %v304_v17  }
 0x461   :  { %874 = vset.pattern.permute.xlu0 %v973_v51  ;;  %875 = vset.pattern.permute.xlu1 %v972_v50 }
 0x4dc   :  { %v321_v20 = vpop.permute.xlu0 %320  ;;  %v308_v21 = vpop.permute.xlu1 %307 }
 0x4dd   :  { %v329_v22 = vrot.slane %v321_v20, %v1090_v58  ;;  %v316_v23 = vrot.slane %v308_v21, %v1090_v58 }
 0x4df   :  { %v317_v26 = vmul.f32 %v316_v23, %v1070_v29  ;;  %v330_v28 = vmul.f32 %v329_v22, %v1074_v31 }
 0x4e1   :  { %v318_v30 = vadd.f32 %v317_v26, %v188_v24 }
 0x4e3   :  { %v331_v33 = vadd.f32 %v330_v28, %v318_v30 }
 0x4e5   :  { %897 = vtanh.f32 %v331_v33  ;;  %v770_v36 = vmul.f32 -1.442695, %v331_v33 }
 0x4e7   :  { %899 = vpow2.f32 %v770_v36 }
 0x4ef   :  { %v898_v35 = vpop.eup %897 }
 0x4f0   :  { %341 = vrot.lane.b32.xlu1 %v898_v35, %s970_s2 }
 0x4f1   :  { %v900_v34 = vpop.eup %899 }
 0x4f2   :  { %v335_v37 = vadd.f32 1.0, %v900_v34 }
 0x4f4   :  { %901 = vrcp.f32 %v335_v37 }
 0x4fe   :  { %v902_v38 = vpop.eup %901 }
 0x4ff   :  { %v339_v41 = vmul.f32 %v902_v38, %v298_v14 }
 0x562   :  { %v342_v39 = vpop.permute.xlu1 %341 }
 0x563   :  { %v344_v40 = vmul.f32 %v902_v38, %v342_v39 }
 0x565   :  { %346 = vrot.lane.b32.xlu0 %v344_v40, %s971_s3 }
 0x5d7   :  { %v347_v42 = vpop.permute.xlu0 %346 }
 0x5d8   :  { %v349_v43 = vadd.f32 %v347_v42, %v339_v41  ;;  %v206_v41 = vcombine.high %v198_v13, %v198_v13 }
 0x5da   :  { %903 = vtanh.f32 %v349_v43 }
 0x5e4   :  { %v904_v44 = vpop.eup %903 }
 0x5e5   :  { %352 = vrot.lane.b32.xlu1 %v904_v44, %s971_s3 }
 0x657   :  { %v353_v45 = vpop.permute.xlu1 %352 }
 0x658   :  { %v355_v46 = vmul.f32 %v902_v38, %v353_v45 }
 0x65a   :  { %371 = vperm.xlu1 %875, %v355_v46   ;;  %358 = vperm.xlu0 %874, %v355_v46  }
 0x6d9   :  { %v372_v47 = vpop.permute.xlu1 %371  ;;  %v359_v48 = vpop.permute.xlu0 %358 }
 0x6da   :  { %v380_v49 = vrot.slane %v372_v47, %v1090_v58  ;;  %v367_v52 = vrot.slane %v359_v48, %v1090_v58 }
 0x6dc   :  { %v368_v54 = vmul.f32 %v367_v52, %v1070_v29  ;;  %v381_v55 = vmul.f32 %v380_v49, %v1074_v31 }
 0x6de   :  { %v369_v56 = vadd.f32 %v368_v54, %v190_v53 }
 0x6e0   :  { %v382_v57 = vadd.f32 %v381_v55, %v369_v56 }
 0x6e2   :  { %905 = vtanh.f32 %v382_v57  ;;  %v771_v60 = vmul.f32 -1.442695, %v382_v57 }
 0x6e4   :  { %907 = vpow2.f32 %v771_v60 }
 0x6ec   :  { %v906_v59 = vpop.eup %905 }
 0x6ed   :  { %392 = vrot.lane.b32.xlu1 %v906_v59, %s970_s2 }
 0x6ee   :  { %v908_v61 = vpop.eup %907 }
 0x6ef   :  { %v386_v62 = vadd.f32 1.0, %v908_v61 }
 0x6f1   :  { %909 = vrcp.f32 %v386_v62  ;;  %v191_v62 = vcombine.high %v1076_v32, %v1076_v32 }
 0x6fb   :  { %v910_v63 = vpop.eup %909 }
 0x6fc   :  { %v390_v2 = vmul.f32 %v910_v63, %v349_v43 }
 0x75f   :  { %v393_v0 = vpop.permute.xlu1 %392 }
 0x760   :  { %v395_v1 = vmul.f32 %v910_v63, %v393_v0 }
 0x762   :  { %397 = vrot.lane.b32.xlu0 %v395_v1, %s971_s3 }
 0x7d4   :  { %v398_v3 = vpop.permute.xlu0 %397 }
 0x7d5   :  { %v400_v4 = vadd.f32 %v398_v3, %v390_v2  ;;  %v205_v3 = vrot.slane %v191_v62, %v1054_v18  ;;  %v665_v62 = vld [vmem:[%s1237_s6 + $0x50] sm:$0xff] }
 0x7d7   :  { %911 = vtanh.f32 %v400_v4 }
 0x7e1   :  { %v912_v5 = vpop.eup %911 }
 0x7e2   :  { %403 = vrot.lane.b32.xlu1 %v912_v5, %s971_s3 }
 0x854   :  { %v404_v6 = vpop.permute.xlu1 %403 }
 0x855   :  { %v406_v7 = vmul.f32 %v910_v63, %v404_v6 }
 0x857   :  { %422 = vperm.xlu1 %875, %v406_v7   ;;  %409 = vperm.xlu0 %874, %v406_v7  }
 0x85b   :  { %876 = vset.pattern.permute.xlu1 %v973_v51  ;;  %877 = vset.pattern.permute.xlu0 %v972_v50 }
 0x8d6   :  { %v423_v8 = vpop.permute.xlu1 %422  ;;  %v410_v10 = vpop.permute.xlu0 %409 }
 0x8d7   :  { %v431_v11 = vrot.slane %v423_v8, %v1090_v58  ;;  %v418_v12 = vrot.slane %v410_v10, %v1090_v58 }
 0x8d9   :  { %v419_v14 = vmul.f32 %v418_v12, %v1070_v29  ;;  %v432_v15 = vmul.f32 %v431_v11, %v1074_v31 }
 0x8db   :  { %v420_v16 = vadd.f32 %v419_v14, %v198_v13 }
 0x8dd   :  { %v433_v17 = vadd.f32 %v432_v15, %v420_v16 }
 0x8df   :  { %913 = vtanh.f32 %v433_v17  ;;  %v772_v20 = vmul.f32 -1.442695, %v433_v17 }
 0x8e1   :  { %915 = vpow2.f32 %v772_v20 }
 0x8e9   :  { %v914_v19 = vpop.eup %913 }
 0x8ea   :  { %443 = vrot.lane.b32.xlu0 %v914_v19, %s970_s2 }
 0x8eb   :  { %v916_v21 = vpop.eup %915 }
 0x8ec   :  { %v437_v22 = vadd.f32 1.0, %v916_v21 }
 0x8ee   :  { %917 = vrcp.f32 %v437_v22 }
 0x8f8   :  { %v918_v23 = vpop.eup %917 }
 0x8f9   :  { %v441_v28 = vmul.f32 %v918_v23, %v400_v4 }
 0x95c   :  { %v444_v24 = vpop.permute.xlu0 %443 }
 0x95d   :  { %v446_v26 = vmul.f32 %v918_v23, %v444_v24  ;;  %v207_v24 = vcombine.high %v205_v3, %v205_v3 }
 0x95f   :  { %448 = vrot.lane.b32.xlu1 %v446_v26, %s971_s3 }
 0x9d1   :  { %v449_v30 = vpop.permute.xlu1 %448 }
 0x9d2   :  { %v451_v33 = vadd.f32 %v449_v30, %v441_v28 }
 0x9d4   :  { %919 = vtanh.f32 %v451_v33 }
 0x9de   :  { %v920_v35 = vpop.eup %919 }
 0x9df   :  { %454 = vrot.lane.b32.xlu0 %v920_v35, %s971_s3 }
 0xa51   :  { %v455_v36 = vpop.permute.xlu0 %454 }
 0xa52   :  { %v457_v34 = vmul.f32 %v918_v23, %v455_v36 }
 0xa54   :  { %473 = vperm.xlu0 %877, %v457_v34   ;;  %460 = vperm.xlu1 %876, %v457_v34  }
 0xad3   :  { %v474_v37 = vpop.permute.xlu0 %473  ;;  %v461_v38 = vpop.permute.xlu1 %460 }
 0xad4   :  { %v482_v39 = vrot.slane %v474_v37, %v1090_v58  ;;  %v469_v40 = vrot.slane %v461_v38, %v1090_v58 }
 0xad6   :  { %v470_v42 = vmul.f32 %v469_v40, %v1070_v29  ;;  %v483_v43 = vmul.f32 %v482_v39, %v1074_v31 }
 0xad8   :  { %v471_v44 = vadd.f32 %v470_v42, %v206_v41 }
 0xada   :  { %v484_v45 = vadd.f32 %v483_v43, %v471_v44  ;;  %v656_v43 = vld [vmem:[%s1237_s6 + $0x8] sm:$0xff]  ;;  %v657_v44 = vld [vmem:[%s1237_s6 + $0x10] sm:$0xff] }
 0xadc   :  { %921 = vtanh.f32 %v484_v45  ;;  %v773_v47 = vmul.f32 -1.442695, %v484_v45  ;;  %v975_v45 = vmov 0.0|0.0  }
 0xadd   :  { %838 = vmatprep.subr.bf16.mxu1 %v975_v45 }
 0xade   :  { %923 = vpow2.f32 %v773_v47  ;;  %v658_v47 = vld [vmem:[%s1237_s6 + $0x18] sm:$0xff] }
 0xae6   :  { %v922_v46 = vpop.eup %921 }
 0xae7   :  { %494 = vrot.lane.b32.xlu1 %v922_v46, %s970_s2 }
 0xae8   :  { %v924_v48 = vpop.eup %923 }
 0xae9   :  { %v488_v49 = vadd.f32 1.0, %v924_v48  ;;  %v842_v48 = vpack.c.bf16 %v658_v47, %v657_v44 }
 0xaeb   :  { %925 = vrcp.f32 %v488_v49  ;;  %v659_v49 = vld [vmem:[%s1237_s6 + $0x20] sm:$0xff] }
 0xaf5   :  { %v926_v52 = vpop.eup %925 }
 0xaf6   :  { %v492_v55 = vmul.f32 %v926_v52, %v451_v33 }
 0xb59   :  { %v495_v53 = vpop.permute.xlu1 %494 }
 0xb5a   :  { %v497_v54 = vmul.f32 %v926_v52, %v495_v53 }
 0xb5c   :  { %499 = vrot.lane.b32.xlu1 %v497_v54, %s971_s3 }
 0xbce   :  { %v500_v56 = vpop.permute.xlu1 %499 }
 0xbcf   :  { %v502_v57 = vadd.f32 %v500_v56, %v492_v55  ;;  %v661_v55 = vld [vmem:[%s1237_s6 + $0x30] sm:$0xff]  ;;  %v662_v56 = vld [vmem:[%s1237_s6 + $0x38] sm:$0xff] }
 0xbd1   :  { %927 = vtanh.f32 %v502_v57 }
 0xbdb   :  { %v928_v59 = vpop.eup %927 }
 0xbdc   :  { %505 = vrot.lane.b32.xlu0 %v928_v59, %s971_s3  ;;  %v663_v59 = vld [vmem:[%s1237_s6 + $0x40] sm:$0xff] }
 0xc4e   :  { %v506_v60 = vpop.permute.xlu0 %505 }
 0xc4f   :  { %v508_v61 = vmul.f32 %v926_v52, %v506_v60  ;;  %v660_v52 = vld [vmem:[%s1237_s6 + $0x28] sm:$0xff] }
 0xc50   :  { %v845_v53 = vpack.c.bf16 %v660_v52, %v659_v49  ;;  %v664_v60 = vld [vmem:[%s1237_s6 + $0x48] sm:$0xff] }
 0xc51   :  { %524 = vperm.xlu0 %877, %v508_v61   ;;  %511 = vperm.xlu1 %876, %v508_v61   ;;  %v851_v61 = vpack.c.bf16 %v664_v60, %v663_v59 }
 0xc55   :  { %878 = vset.pattern.permute.xlu0 %v973_v51  ;;  %879 = vset.pattern.permute.xlu1 %v972_v50 }
 0xcd0   :  { %v525_v63 = vpop.permute.xlu0 %524  ;;  %v512_v0 = vpop.permute.xlu1 %511 }
 0xcd1   :  { %v533_v1 = vrot.slane %v525_v63, %v1090_v58  ;;  %v520_v2 = vrot.slane %v512_v0, %v1090_v58  ;;  %v666_v63 = vld [vmem:[%s1237_s6 + $0x58] sm:$0xff] }
 0xcd2   :  { %v854_v0 = vpack.c.bf16 %v666_v63, %v665_v62 }
 0xcd3   :  { %v521_v4 = vmul.f32 %v520_v2, %v1070_v29  ;;  %v534_v5 = vmul.f32 %v533_v1, %v1074_v31 }
 0xcd5   :  { %v522_v6 = vadd.f32 %v521_v4, %v205_v3  ;;  %v667_v4 = vld [vmem:[%s1237_s6 + $0x60] sm:$0xff] }
 0xcd7   :  { %v535_v7 = vadd.f32 %v534_v5, %v522_v6  ;;  %v668_v5 = vld [vmem:[%s1237_s6 + $0x68] sm:$0xff] }
 0xcd8   :  { %v857_v6 = vpack.c.bf16 %v668_v5, %v667_v4 }
 0xcd9   :  { %929 = vtanh.f32 %v535_v7  ;;  %v774_v8 = vmul.f32 -1.442695, %v535_v7  ;;  %v669_v7 = vld [vmem:[%s1237_s6 + $0x70] sm:$0xff] }
 0xcdb   :  { %931 = vpow2.f32 %v774_v8 }
 0xce3   :  { %v930_v51 = vpop.eup %929 }
 0xce4   :  { %545 = vrot.lane.b32.xlu1 %v930_v51, %s970_s2  ;;  %v670_v51 = vld [vmem:[%s1237_s6 + $0x78] sm:$0xff] }
 0xce5   :  { %v932_v32 = vpop.eup %931  ;;  %v860_v8 = vpack.c.bf16 %v670_v51, %v669_v7 }
 0xce6   :  { %v539_v10 = vadd.f32 1.0, %v932_v32  ;;  %v977_v32 = vmov 0.0  }
 0xce7   :  { %835 = vmatprep.mubr.msk.f32.mxu1 %vm976_vm2, %v977_v32 }
 0xce8   :  { %933 = vrcp.f32 %v539_v10  ;;  %v217_v10 = vld [vmem:[%s1235_s4] sm:$0x3] }
 0xcf2   :  { %v934_v11 = vpop.eup %933 }
 0xcf3   :  { %v543_v18 = vmul.f32 %v934_v11, %v502_v57  ;;  %v848_v57 = vpack.c.bf16 %v662_v56, %v661_v55 }
 0xd56   :  { %v546_v12 = vpop.permute.xlu1 %545 }
 0xd57   :  { %v548_v13 = vmul.f32 %v934_v11, %v546_v12 }
 0xd59   :  { %550 = vrot.lane.b32.xlu0 %v548_v13, %s971_s3 }
 0xdcb   :  { %v551_v14 = vpop.permute.xlu0 %550 }
 0xdcc   :  { %v553_v15 = vadd.f32 %v551_v14, %v543_v18  ;;  %v651_v18 = vrot.slane %v217_v10, %v226_v27 }
 0xdce   :  { %935 = vtanh.f32 %v553_v15 }
 0xdd8   :  { %v936_v16 = vpop.eup %935 }
 0xdd9   :  { %556 = vrot.lane.b32.xlu1 %v936_v16, %s971_s3 }
 0xe4b   :  { %v557_v17 = vpop.permute.xlu1 %556 }
 0xe4c   :  { %v559_v19 = vmul.f32 %v934_v11, %v557_v17  ;;  %v628_v11 = vrot.slane %v217_v10, %v220_v25  ;;  %v777_v25 = vld [vmem:[%s1238_s7] ss:$0 sm:$0xff] }
 0xe4e   :  { %575 = vperm.xlu1 %879, %v559_v19   ;;  %562 = vperm.xlu0 %878, %v559_v19  }
 0xecd   :  { %v576_v20 = vpop.permute.xlu1 %575  ;;  %v563_v21 = vpop.permute.xlu0 %562 }
 0xece   :  { %v584_v22 = vrot.slane %v576_v20, %v1090_v58  ;;  %v571_v23 = vrot.slane %v563_v21, %v1090_v58 }
 0xed0   :  { %v572_v26 = vmul.f32 %v571_v23, %v1070_v29  ;;  %v585_v28 = vmul.f32 %v584_v22, %v1074_v31  ;;  %v655_v31 = vld [vmem:[%s1237_s6] sm:$0xff] }
 0xed1   :  { %v839_v46 = vpack.c.bf16 %v656_v43, %v655_v31 }
 0xed2   :  { %v573_v30 = vadd.f32 %v572_v26, %v207_v24 }
 0xed3   :  { %840 = vmatpush3.bf16.msra.mxu1 %v839_v46 }
 0xed4   :  { %v586_v33 = vadd.f32 %v585_v28, %v573_v30  ;;  %841 = vmatprep.subr.bf16.mxu1 %v975_v45 }
 0xed6   :  { %937 = vtanh.f32 %v586_v33  ;;  %v775_v36 = vmul.f32 -1.442695, %v586_v33 }
 0xed7   :  { %843 = vmatpush3.bf16.msra.mxu1 %v842_v48 }
 0xed8   :  { %939 = vpow2.f32 %v775_v36  ;;  %844 = vmatprep.subr.bf16.mxu1 %v975_v45 }
 0xedb   :  { %846 = vmatpush3.bf16.msra.mxu1 %v845_v53 }
 0xedc   :  { %847 = vmatprep.subr.bf16.mxu1 %v975_v45 }
 0xedf   :  { %849 = vmatpush3.bf16.msra.mxu1 %v848_v57 }
 0xee0   :  { %v938_v35 = vpop.eup %937  ;;  %850 = vmatprep.subr.bf16.mxu1 %v975_v45 }
 0xee1   :  { %596 = vrot.lane.b32.xlu1 %v938_v35, %s970_s2 }
 0xee2   :  { %v940_v34 = vpop.eup %939 }
 0xee3   :  { %v590_v37 = vadd.f32 1.0, %v940_v34  ;;  %852 = vmatpush3.bf16.msra.mxu1 %v851_v61 }
 0xee4   :  { %853 = vmatprep.subr.bf16.mxu1 %v975_v45 }
 0xee5   :  { %941 = vrcp.f32 %v590_v37 }
 0xee7   :  { %855 = vmatpush3.bf16.msra.mxu1 %v854_v0 }
 0xee8   :  { %856 = vmatprep.subr.bf16.mxu1 %v975_v45 }
 0xeeb   :  { %858 = vmatpush3.bf16.msra.mxu1 %v857_v6 }
 0xeec   :  { %859 = vmatprep.subr.bf16.mxu1 %v975_v45 }
 0xeef   :  { %v942_v38 = vpop.eup %941  ;;  %861 = vmatpush3.bf16.msra.mxu1 %v860_v8 }
 0xef0   :  { %v594_v41 = vmul.f32 %v942_v38, %v553_v15  ;;  %v776_v15 = vld [vmem:[%s1236_s5] ss:$0 sm:$0xff] }
 0xf53   :  { %v597_v39 = vpop.permute.xlu1 %596 }
 0xf54   :  { %v599_v40 = vmul.f32 %v942_v38, %v597_v39 }
 0xf56   :  { %601 = vrot.lane.b32.xlu0 %v599_v40, %s971_s3 }
 0xfc8   :  { %v602_v29 = vpop.permute.xlu0 %601 }
 0xfc9   :  { %v604_v42 = vadd.f32 %v602_v29, %v594_v41 }
 0xfcb   :  { %943 = vtanh.f32 %v604_v42 }
 0xfd5   :  { %v944_v54 = vpop.eup %943 }
 0xfd6   :  { %607 = vrot.lane.b32.xlu1 %v944_v54, %s971_s3 }
0x1048   :  { %v608_v1 = vpop.permute.xlu1 %607 }
0x1049   :  { %v610_v2 = vmul.f32 %v942_v38, %v608_v1 }
0x104b   :  { %v611_v3 = vmax.f32 %v610_v2, 0.0 }
0x104d   :  { %638 = vperm.xlu1 %879, %v611_v3   ;;  %615 = vperm.xlu0 %878, %v611_v3  }
0x1051   :  { %880 = vset.pattern.permute.xlu0 %v972_v50 }
0x10cc   :  { %v639_v12 = vpop.permute.xlu1 %638  ;;  %v616_v13 = vpop.permute.xlu0 %615 }
0x10cd   :  { %v647_v14 = vrot.slane %v639_v12, %v1090_v58  ;;  %v624_v50 = vrot.slane %v616_v13, %v1090_v58 }
0x10cf   :  { %v629_v16 = vmul.f32 %v628_v11, %v624_v50  ;;  %v652_v17 = vmul.f32 %v651_v18, %v647_v14 }
0x10d1   :  { %v636_v19 = vadd.f32 %v776_v15, %v629_v16 }
0x10d3   :  { %v653_v20 = vadd.f32 %v652_v17, %v636_v19 }
0x10d5   :  { %v654_v21 = vmax.f32 %v653_v20, 0.0 }
0x10d7   :  { %836 = vmatmul.mubr.f32.vlgmr.msra.gmra.mrb[0].mxu1 %v654_v21 }
0x11aa   :  { %v744_v9 = vpop.f32.mrb[0].mxu1 }
0x11ab   :  { %v745_v27 = vadd.f32 %v777_v25, %v744_v9  ;;  %v837_v58 = vpop.f32.mrb[1].mxu1 }
0x11ad   :  { %749 = vst.msk [vmem:[#allocation2] sm:$0x3] %vm748_vm3, %v745_v27 }
0x11ae   :  { %956 = shalt.err (!%p953_p4)
}
0x11af   :  { %s957_s16 = scalar_lea.hbm %s1239_s8, 32 }
0x11b0   :  { %p958_p5 = scmp.ne.s32.totalorder %s1239_s8, %s957_s16  ;;  %p961_p6 = scmp.lt.u32.totalorder %s957_s16, %s1239_s8 }
0x11b2   :  { %p963_p7 = pnand %p961_p6, %p958_p5 }
0x11b4   :  { %966 = shalt.err (!%p963_p7)
}
0x11b5   :  { %759 = dma.vmem_to_hbm [thread:$0]  %s757_s14, 32, %s1239_s8, [#allocation3]  }
0x11b6   :  { %967 = dma.done.wait [#allocation3], 32  }
0x11b7   :  { %968 = vsyncadd [#allocation3], 4294967264 }
0x11b8   :  { %763 = vsyncpa [#allocation3], 1 }

</bundles_post_ra>
